<compile_context>
chip_gen: v5e
topology: v5e:2x2
jax: 0.10.0
libtpu: 0.0.40
codegen_flags: <defaults>
</compile_context>

<pallas_src>
import jax
import jax.numpy as jnp
from jax.experimental import pallas as pl
from jax.experimental.pallas import tpu as pltpu

_BN_EPS = 1e-5


def _cdiv(a, b):
    return -(-a // b)


def _round_up(a, m):
    return ((a + m - 1) // m) * m


def _leaky(v):
    # LeakyReLU(0.01): max(v, 0.01*v)  (2 VALU ops vs cmp+mul+select)
    return jnp.maximum(v, 0.01 * v)


def mlp_kernel(x_ref,
               w1_ref, b1_ref,
               w2_ref, b2_ref,
               w3_ref, b3_ref,
               w4_ref, b4_ref,
               o_ref):
    # Layer 1: Linear(input, 256) -> LeakyReLU   (BN1 folded into w2/b2)
    x = x_ref[...]                                              # bf16 (cast in wrapper)
    h = jnp.dot(x, w1_ref[...], preferred_element_type=jnp.float32) + b1_ref[...]
    h = _leaky(h.astype(jnp.bfloat16))                          # bf16 epilogue

    # Layer 2: Linear(256, 128) -> LeakyReLU     (BN2 folded into w3/b3)
    h = jnp.dot(h, w2_ref[...], preferred_element_type=jnp.float32) + b2_ref[...]
    h = _leaky(h.astype(jnp.bfloat16))

    # Layer 3: Linear(128, 64) -> LeakyReLU      (BN3 folded into w4/b4)
    h = jnp.dot(h, w3_ref[...], preferred_element_type=jnp.float32) + b3_ref[...]
    h = _leaky(h)                                               # f32 (feeds VPU head)

    # Head: Linear(64, 1) as VPU multiply + lane reduction (no 1-column MXU pass)
    w4 = w4_ref[...].astype(jnp.float32)                        # (1, 64)
    o_ref[...] = jnp.sum(h * w4, axis=-1, keepdims=True) + b4_ref[...]


def binary_classification_forward(x, fused, tile_b=4096):
    """x: (B, input_size); fused: dict from fold_params(). Returns (B, 1) float32."""
    B, D = x.shape
    xb = x if x.dtype == jnp.bfloat16 else x.astype(jnp.bfloat16)

    # Batch tile: multiple of 16 (bf16 sublanes); aim for >= 2 grid steps when B is
    # large so both v7x TensorCores get work. If the tile covers the whole batch,
    # use the exact batch (block == full array -> no padding / masking needed).
    tb_target = max(16, min(tile_b, _round_up(_cdiv(B, 2), 16)))
    if tb_target >= B:
        tb, num_tiles = B, 1
    else:
        tb, num_tiles = tb_target, _cdiv(B, tb_target)
        # Ragged last tile (num_tiles*tb > B) is handled by Pallas OOB masking:
        # rows are independent, OOB output writes are dropped. No jnp.pad copy.

    args = (xb,
            fused["w1"], fused["b1"],
            fused["w2"], fused["b2"],
            fused["w3"], fused["b3"],
            fused["w4"], fused["b4"])

    def const_spec(a):
        # whole array, fixed block index -> stays resident in VMEM across tiles
        return pl.BlockSpec(a.shape, lambda i: (0, 0))

    out = pl.pallas_call(
        mlp_kernel,
        out_shape=jax.ShapeDtypeStruct((B, 1), jnp.float32),
        grid=(num_tiles,),
        in_specs=[pl.BlockSpec((tb, D), lambda i: (i, 0))]
                 + [const_spec(a) for a in args[1:]],
        out_specs=pl.BlockSpec((tb, 1), lambda i: (i, 0)),
        compiler_params=pltpu.CompilerParams(
            dimension_semantics=("parallel",),        # v7x: shard batch tiles over 2 TCs
            vmem_limit_bytes=48 * 1024 * 1024),       # sized for v7x 64 MiB/TC with headroom
    )(*args)
    return out


def make_params(key, input_size):
    """Deterministic synthetic parameters matching the PyTorch module (raw form)."""
    dims = [(input_size, 256), (256, 128), (128, 64), (64, 1)]
    params = {}
    for li, (fin, fout) in enumerate(dims, start=1):
        key, kw, kb = jax.random.split(key, 3)
        bound = 1.0 / (fin ** 0.5)
        # stored as (in, out) == PyTorch nn.Linear weight.T
        params[f"w{li}"] = jax.random.uniform(kw, (fin, fout), jnp.float32, -bound, bound)
        params[f"b{li}"] = jax.random.uniform(kb, (1, fout), jnp.float32, -bound, bound)
        if li <= 3:  # BatchNorm1d after the first three linears
            key, kg, kbeta, km, kv = jax.random.split(key, 5)
            params[f"gamma{li}"] = 1.0 + 0.1 * jax.random.normal(kg, (1, fout), jnp.float32)
            params[f"beta{li}"] = 0.1 * jax.random.normal(kbeta, (1, fout), jnp.float32)
            params[f"rmean{li}"] = 0.1 * jax.random.normal(km, (1, fout), jnp.float32)
            params[f"rvar{li}"] = 1.0 + 0.1 * jax.random.uniform(kv, (1, fout), jnp.float32)
    return params


def fold_params(params, eps=_BN_EPS, matmul_dtype=jnp.bfloat16):
    """One-time transform: fold eval-mode BN affines into the following Linear and
    cast matmul weights to bf16. Biases stay f32."""
    s, t = {}, {}
    for li in range(1, 4):
        scale = params[f"gamma{li}"] * jax.lax.rsqrt(params[f"rvar{li}"] + eps)
        shift = params[f"beta{li}"] - params[f"rmean{li}"] * scale
        s[li], t[li] = scale, shift

    w1 = params["w1"]
    b1 = params["b1"]
    w2 = params["w2"] * s[1].T                       # row-scale (256,128) by BN1 scale
    b2 = params["b2"] + t[1] @ params["w2"]
    w3 = params["w3"] * s[2].T
    b3 = params["b3"] + t[2] @ params["w3"]
    w4_row = params["w4"].T                          # (1, 64)
    w4_f = w4_row * s[3]
    b4 = params["b4"].reshape(1, 1) + jnp.sum(t[3] * w4_row, axis=-1, keepdims=True)

    return {
        "w1": w1.astype(matmul_dtype), "b1": b1,
        "w2": w2.astype(matmul_dtype), "b2": b2,
        "w3": w3.astype(matmul_dtype), "b3": b3,
        "w4": w4_f.astype(matmul_dtype), "b4": b4,
    }


def reference_forward(x, params, eps=_BN_EPS):
    """Pure-JAX f32 reference with the original (unfolded) module semantics."""
    h = x
    for li in range(1, 4):
        h = h @ params[f"w{li}"] + params[f"b{li}"]
        h = jnp.where(h > 0, h, 0.01 * h)
        scale = params[f"gamma{li}"] * jax.lax.rsqrt(params[f"rvar{li}"] + eps)
        shift = params[f"beta{li}"] - params[f"rmean{li}"] * scale
        h = h * scale + shift
        # Dropout(0.5): identity in eval mode
    return h @ params["w4"] + params["b4"]


def reference_forward_fused(x, fused):
    """Pure-JAX reference mirroring the kernel's folded params + bf16 math exactly."""
    xb = x.astype(jnp.bfloat16)
    h = jnp.dot(xb, fused["w1"], preferred_element_type=jnp.float32) + fused["b1"]
    h = _leaky(h.astype(jnp.bfloat16))
    h = jnp.dot(h, fused["w2"], preferred_element_type=jnp.float32) + fused["b2"]
    h = _leaky(h.astype(jnp.bfloat16))
    h = jnp.dot(h, fused["w3"], preferred_element_type=jnp.float32) + fused["b3"]
    h = _leaky(h)
    return (jnp.sum(h * fused["w4"].astype(jnp.float32), axis=-1, keepdims=True)
            + fused["b4"])


if __name__ == "__main__":
    key = jax.random.PRNGKey(0)
    key, kx, kp, kx2, kx3 = jax.random.split(key, 5)

    batch = 8
    input_size = 32
    x = jax.random.normal(kx, (batch, input_size), jnp.float32)
    params = make_params(kp, input_size)
    fused = fold_params(params)

    # Single-tile (small batch, block == full array) path
    out = jax.block_until_ready(binary_classification_forward(x, fused))
    assert out.shape == (batch, 1), out.shape

    ref_fused = reference_forward_fused(x, fused)            # same math, tight check
    ref_full = reference_forward(x, params)                  # module semantics, loose check
    assert jnp.allclose(out, ref_fused, atol=5e-3, rtol=5e-3), "mismatch vs fused reference"
    assert jnp.allclose(out, ref_full, atol=5e-2, rtol=5e-2), "mismatch vs module reference"

    # Multi-tile path with a ragged last tile (exercises OOB masking, no padding)
    x2 = jax.random.normal(kx2, (300, input_size), jnp.float32)
    out2 = jax.block_until_ready(binary_classification_forward(x2, fused, tile_b=128))
    ref2 = reference_forward_fused(x2, fused)
    assert out2.shape == (300, 1), out2.shape
    assert jnp.allclose(out2, ref2, atol=5e-3, rtol=5e-3), "mismatch on ragged tiled path"

    # Multi-tile path with an evenly dividing tile
    x3 = jax.random.normal(kx3, (256, input_size), jnp.float32)
    out3 = jax.block_until_ready(binary_classification_forward(x3, fused, tile_b=128))
    ref3 = reference_forward_fused(x3, fused)
    assert jnp.allclose(out3, ref3, atol=5e-3, rtol=5e-3), "mismatch on even tiled path"

    print("KERNEL_OK")
</pallas_src>

<mosaic_0001>
module attributes {stable_mosaic.version = 11 : i64} {
  func.func @mlp_kernel(%arg0: i32, %arg1: memref<8x32xbf16, #tpu.memory_space<vmem>>, %arg2: memref<32x256xbf16, #tpu.memory_space<vmem>>, %arg3: memref<1x256xf32, #tpu.memory_space<vmem>>, %arg4: memref<256x128xbf16, #tpu.memory_space<vmem>>, %arg5: memref<1x128xf32, #tpu.memory_space<vmem>>, %arg6: memref<128x64xbf16, #tpu.memory_space<vmem>>, %arg7: memref<1x64xf32, #tpu.memory_space<vmem>>, %arg8: memref<1x64xbf16, #tpu.memory_space<vmem>>, %arg9: memref<1x1xf32, #tpu.memory_space<vmem>>, %arg10: memref<8x1xf32, #tpu.memory_space<vmem>>) attributes {dimension_semantics = [#tpu.dimension_semantics<parallel>], iteration_bounds = array<i64: 1>, scalar_prefetch = 0 : i64, scratch_operands = 0 : i64, tpu.core_type = #tpu.core_type<tc>, window_params = [{transform_indices = @transform_0, window_bounds = array<i64: 8, 32>}, {pipeline_mode = #tpu.pipeline_mode<synchronous>, transform_indices = @transform_1, window_bounds = array<i64: 32, 256>}, {pipeline_mode = #tpu.pipeline_mode<synchronous>, transform_indices = @transform_2, window_bounds = array<i64: 1, 256>}, {pipeline_mode = #tpu.pipeline_mode<synchronous>, transform_indices = @transform_3, window_bounds = array<i64: 256, 128>}, {pipeline_mode = #tpu.pipeline_mode<synchronous>, transform_indices = @transform_4, window_bounds = array<i64: 1, 128>}, {pipeline_mode = #tpu.pipeline_mode<synchronous>, transform_indices = @transform_5, window_bounds = array<i64: 128, 64>}, {pipeline_mode = #tpu.pipeline_mode<synchronous>, transform_indices = @transform_6, window_bounds = array<i64: 1, 64>}, {pipeline_mode = #tpu.pipeline_mode<synchronous>, transform_indices = @transform_7, window_bounds = array<i64: 1, 64>}, {pipeline_mode = #tpu.pipeline_mode<synchronous>, transform_indices = @transform_8, window_bounds = array<i64: 1, 1>}, {transform_indices = @transform_9, window_bounds = array<i64: 8, 1>}]} {
    %c0 = arith.constant 0 : index
    %c0_0 = arith.constant 0 : index
    %0 = vector.load %arg1[%c0, %c0_0] : memref<8x32xbf16, #tpu.memory_space<vmem>>, vector<8x32xbf16>
    %c0_1 = arith.constant 0 : index
    %c0_2 = arith.constant 0 : index
    %1 = vector.load %arg2[%c0_1, %c0_2] : memref<32x256xbf16, #tpu.memory_space<vmem>>, vector<32x256xbf16>
    %cst = arith.constant dense<0.000000e+00> : vector<8x256xf32>
    %2 = tpu.matmul %0, %1, %cst {dimension_numbers = #tpu.dot_dimension_numbers<[1], [0], [0], [1], [0, 0, 1, 1], [], []>} : vector<8x32xbf16>, vector<32x256xbf16>, vector<8x256xf32> -> vector<8x256xf32>
    %c0_3 = arith.constant 0 : index
    %c0_4 = arith.constant 0 : index
    %3 = vector.load %arg3[%c0_3, %c0_4] : memref<1x256xf32, #tpu.memory_space<vmem>>, vector<1x256xf32>
    %4 = vector.broadcast %3 : vector<1x256xf32> to vector<8x256xf32>
    %5 = arith.addf %2, %4 : vector<8x256xf32>
    %6 = arith.truncf %5 : vector<8x256xf32> to vector<8x256xbf16>
    %cst_5 = arith.constant 1.000980e-02 : bf16
    %7 = vector.broadcast %cst_5 : bf16 to vector<8x256xbf16>
    %8 = arith.mulf %7, %6 : vector<8x256xbf16>
    %9 = arith.maximumf %6, %8 : vector<8x256xbf16>
    %c0_6 = arith.constant 0 : index
    %c0_7 = arith.constant 0 : index
    %10 = vector.load %arg4[%c0_6, %c0_7] : memref<256x128xbf16, #tpu.memory_space<vmem>>, vector<256x128xbf16>
    %cst_8 = arith.constant dense<0.000000e+00> : vector<8x128xf32>
    %11 = tpu.matmul %9, %10, %cst_8 {dimension_numbers = #tpu.dot_dimension_numbers<[1], [0], [0], [1], [0, 0, 1, 1], [], []>} : vector<8x256xbf16>, vector<256x128xbf16>, vector<8x128xf32> -> vector<8x128xf32>
    %c0_9 = arith.constant 0 : index
    %c0_10 = arith.constant 0 : index
    %12 = vector.load %arg5[%c0_9, %c0_10] : memref<1x128xf32, #tpu.memory_space<vmem>>, vector<1x128xf32>
    %13 = vector.broadcast %12 : vector<1x128xf32> to vector<8x128xf32>
    %14 = arith.addf %11, %13 : vector<8x128xf32>
    %15 = arith.truncf %14 : vector<8x128xf32> to vector<8x128xbf16>
    %cst_11 = arith.constant 1.000980e-02 : bf16
    %16 = vector.broadcast %cst_11 : bf16 to vector<8x128xbf16>
    %17 = arith.mulf %16, %15 : vector<8x128xbf16>
    %18 = arith.maximumf %15, %17 : vector<8x128xbf16>
    %c0_12 = arith.constant 0 : index
    %c0_13 = arith.constant 0 : index
    %19 = vector.load %arg6[%c0_12, %c0_13] : memref<128x64xbf16, #tpu.memory_space<vmem>>, vector<128x64xbf16>
    %cst_14 = arith.constant dense<0.000000e+00> : vector<8x64xf32>
    %20 = tpu.matmul %18, %19, %cst_14 {dimension_numbers = #tpu.dot_dimension_numbers<[1], [0], [0], [1], [0, 0, 1, 1], [], []>} : vector<8x128xbf16>, vector<128x64xbf16>, vector<8x64xf32> -> vector<8x64xf32>
    %c0_15 = arith.constant 0 : index
    %c0_16 = arith.constant 0 : index
    %21 = vector.load %arg7[%c0_15, %c0_16] : memref<1x64xf32, #tpu.memory_space<vmem>>, vector<1x64xf32>
    %22 = vector.broadcast %21 : vector<1x64xf32> to vector<8x64xf32>
    %23 = arith.addf %20, %22 : vector<8x64xf32>
    %cst_17 = arith.constant 0.00999999977 : f32
    %24 = vector.broadcast %cst_17 : f32 to vector<8x64xf32>
    %25 = arith.mulf %24, %23 : vector<8x64xf32>
    %26 = arith.maximumf %23, %25 : vector<8x64xf32>
    %c0_18 = arith.constant 0 : index
    %c0_19 = arith.constant 0 : index
    %27 = vector.load %arg8[%c0_18, %c0_19] : memref<1x64xbf16, #tpu.memory_space<vmem>>, vector<1x64xbf16>
    %28 = arith.extf %27 : vector<1x64xbf16> to vector<1x64xf32>
    %29 = vector.broadcast %28 : vector<1x64xf32> to vector<8x64xf32>
    %30 = arith.mulf %26, %29 : vector<8x64xf32>
    %cst_20 = arith.constant dense<0.000000e+00> : vector<8xf32>
    %31 = vector.multi_reduction <add>, %30, %cst_20 [1] : vector<8x64xf32> to vector<8xf32>
    %32 = vector.shape_cast %31 : vector<8xf32> to vector<8x1xf32>
    %c0_21 = arith.constant 0 : index
    %c0_22 = arith.constant 0 : index
    %33 = vector.load %arg9[%c0_21, %c0_22] : memref<1x1xf32, #tpu.memory_space<vmem>>, vector<1x1xf32>
    %34 = vector.broadcast %33 : vector<1x1xf32> to vector<8x1xf32>
    %35 = arith.addf %32, %34 : vector<8x1xf32>
    %c0_23 = arith.constant 0 : index
    %c0_24 = arith.constant 0 : index
    %36 = vector.load %arg10[%c0_23, %c0_24] : memref<8x1xf32, #tpu.memory_space<vmem>>, vector<8x1xf32>
    tpu.vector_store %arg10[%c0_23, %c0_24], %35 {strides = array<i32>} : memref<8x1xf32, #tpu.memory_space<vmem>>, vector<8x1xf32>,
    return
  }
  func.func @transform_0(%arg0: i32) -> (i32, i32) {
    %c0_i32 = arith.constant 0 : i32
    %c0_i32_0 = arith.constant 0 : i32
    return %arg0, %c0_i32 : i32, i32
  }
  func.func @transform_1(%arg0: i32) -> (i32, i32) {
    %c0_i32 = arith.constant 0 : i32
    %c0_i32_0 = arith.constant 0 : i32
    %c0_i32_1 = arith.constant 0 : i32
    return %c0_i32, %c0_i32_0 : i32, i32
  }
  func.func @transform_2(%arg0: i32) -> (i32, i32) {
    %c0_i32 = arith.constant 0 : i32
    %c0_i32_0 = arith.constant 0 : i32
    %c0_i32_1 = arith.constant 0 : i32
    return %c0_i32, %c0_i32_0 : i32, i32
  }
  func.func @transform_3(%arg0: i32) -> (i32, i32) {
    %c0_i32 = arith.constant 0 : i32
    %c0_i32_0 = arith.constant 0 : i32
    %c0_i32_1 = arith.constant 0 : i32
    return %c0_i32, %c0_i32_0 : i32, i32
  }
  func.func @transform_4(%arg0: i32) -> (i32, i32) {
    %c0_i32 = arith.constant 0 : i32
    %c0_i32_0 = arith.constant 0 : i32
    %c0_i32_1 = arith.constant 0 : i32
    return %c0_i32, %c0_i32_0 : i32, i32
  }
  func.func @transform_5(%arg0: i32) -> (i32, i32) {
    %c0_i32 = arith.constant 0 : i32
    %c0_i32_0 = arith.constant 0 : i32
    %c0_i32_1 = arith.constant 0 : i32
    return %c0_i32, %c0_i32_0 : i32, i32
  }
  func.func @transform_6(%arg0: i32) -> (i32, i32) {
    %c0_i32 = arith.constant 0 : i32
    %c0_i32_0 = arith.constant 0 : i32
    %c0_i32_1 = arith.constant 0 : i32
    return %c0_i32, %c0_i32_0 : i32, i32
  }
  func.func @transform_7(%arg0: i32) -> (i32, i32) {
    %c0_i32 = arith.constant 0 : i32
    %c0_i32_0 = arith.constant 0 : i32
    %c0_i32_1 = arith.constant 0 : i32
    return %c0_i32, %c0_i32_0 : i32, i32
  }
  func.func @transform_8(%arg0: i32) -> (i32, i32) {
    %c0_i32 = arith.constant 0 : i32
    %c0_i32_0 = arith.constant 0 : i32
    %c0_i32_1 = arith.constant 0 : i32
    return %c0_i32, %c0_i32_0 : i32, i32
  }
  func.func @transform_9(%arg0: i32) -> (i32, i32) {
    %c0_i32 = arith.constant 0 : i32
    %c0_i32_0 = arith.constant 0 : i32
    return %arg0, %c0_i32 : i32, i32
  }
}

</mosaic_0001>

<bundles_post_ra>
// kernel: tpu_custom_call.1
= control target key start
LH: loop header
LB: loop body
LE: loop exit
PB: predicated region body
PF: predicated region fallthrough
CT: control target
= control target key end

     0   :  { %s691_s0 = inlined_call_operand.vmem [shape: bf16[8,32], index: 0, kind: input, shape index: {}]   ;;  %s692_s1 = inlined_call_operand.vmem [shape: bf16[32,256], index: 1, kind: input, shape index: {}]   ;;  %s693_s2 = inlined_call_operand.vmem [shape: f32[1,256], index: 2, kind: input, shape index: {}]   ;;  %s694_s3 = inlined_call_operand.hbm [shape: bf16[256,128], index: 3, kind: input, shape index: {}]   ;;  %s695_s4 = inlined_call_operand.vmem [shape: f32[1,128], index: 4, kind: input, shape index: {}]   ;;  %s696_s5 = inlined_call_operand.vmem [shape: bf16[128,64], index: 5, kind: input, shape index: {}]   ;;  %s697_s6 = inlined_call_operand.vmem [shape: f32[1,64], index: 6, kind: input, shape index: {}]   ;;  %s698_s7 = inlined_call_operand.vmem [shape: bf16[1,64], index: 7, kind: input, shape index: {}]   ;;  %s699_s8 = inlined_call_operand.<no memory space> [shape: f32[1,1], index: 8, kind: input, shape index: {}]   ;;  %s700_s9 = inlined_call_operand.vmem [shape: f32[8,1], index: 9, kind: output, shape index: {}]  }
   0x1   :  { %v14_v0 = vstv %s699_s8 }
   0x2   :  { %15 = vst [vmem:[#allocation2] sm:$0x1] %v14_v0 }
   0x3   :  { %16 = vsyncpa [#allocation4], 0  ;;  %s27_s13 = sshll.u32 %s694_s3, 4  ;;  %s566_s14 = smov [#allocation3]   ;;  %s28_s13 = int_to_ptr.hbm [resolvable:$true] %s27_s13 }
   0x4   :  { %s29_s15 = sshll.u32 %s566_s14, 4  ;;  %s567_s16 = smov 64   ;;  %s30_s15 = int_to_ptr.vmem [resolvable:$true] %s29_s15 }
   0x5   :  { %s568_s17 = smov 4  }
   0x6   :  { %35 = dma.hbm_to_vmem [thread:$0]  %s28_s13, 2048, %s30_s15, [#allocation4], %s567_s16, %s567_s16, %s568_s17  }
   0x7   :  { %564 = dma.done.wait [#allocation4], 2048  }
   0x8   :  { %565 = vsyncadd [#allocation4], 4294965248  ;;  %v402_v1 = vld [vmem:[%s692_s1 + $0x10] sm:$0xf]  ;;  %v509_v2 = vld [vmem:[%s692_s1 + $0x14] sm:$0xf0] }
   0x9   :  { %v394_v3 = vld [vmem:[%s692_s1] sm:$0xf]  ;;  %v403_v4 = vor.u32 %v509_v2, %v402_v1  ;;  %v507_v5 = vld [vmem:[%s692_s1 + $0x4] sm:$0xf0]  ;;  %v508_v6 = vld [vmem:[%s692_s1 + $0x14] sm:$0xf] }
   0xa   :  { %v404_v7 = vld [vmem:[%s692_s1 + $0x18] sm:$0xf0]  ;;  %v395_v8 = vor.u32 %v507_v5, %v394_v3  ;;  %v506_v12 = vld [vmem:[%s692_s1 + $0x4] sm:$0xf]  ;;  %v396_v13 = vld [vmem:[%s692_s1 + $0x8] sm:$0xf0] }
   0xb   :  { %92 = vmatpush.bf16.msra.mxu1 %v403_v4  ;;  %v517_v9 = vld [vmem:[#allocation3 + $0x38] sm:$0xff]  ;;  %v407_v11 = vor.u32 %v508_v6, %v404_v7  ;;  %vm82_vm0 = vcmask 261120   ;;  %v399_v15 = vor.u32 %v506_v12, %v396_v13  ;;  %v516_v16 = vld [vmem:[#allocation3 + $0x30] sm:$0xff]  ;;  %v515_v18 = vld [vmem:[#allocation3 + $0x28] sm:$0xff]  ;;  %vm376_vm1 = vcmask 523264  }
   0xc   :  { %v525_v10 = vld [vmem:[#allocation3 + $0x78] sm:$0xff]  ;;  %256 = vmatpush.bf16.msra.mxu2 %v517_v9  ;;  %v524_v17 = vld [vmem:[#allocation3 + $0x70] sm:$0xff]  ;;  %v523_v19 = vld [vmem:[#allocation3 + $0x68] sm:$0xff]  ;;  %vm385_vm2 = vcmask 7168  }
   0xd   :  { %269 = vmatpush.bf16.msra.mxu3 %v525_v10  ;;  %v51_v14 = vld [vmem:[%s691_s0] sm:$0xf]  ;;  %v512_v24 = vld [vmem:[#allocation3 + $0x10] sm:$0xff]  ;;  %v511_v26 = vld [vmem:[#allocation3 + $0x8] sm:$0xff] }
   0xe   :  { %v514_v20 = vld [vmem:[#allocation3 + $0x20] sm:$0xff]  ;;  %v513_v22 = vld [vmem:[#allocation3 + $0x18] sm:$0xff]  ;;  %v520_v25 = vld [vmem:[#allocation3 + $0x50] sm:$0xff] }
   0xf   :  { %93 = vmatpush.bf16.msra.mxu1 %v395_v8  ;;  %v522_v21 = vld [vmem:[#allocation3 + $0x60] sm:$0xff]  ;;  %v521_v23 = vld [vmem:[#allocation3 + $0x58] sm:$0xff]  ;;  %v519_v27 = vld [vmem:[#allocation3 + $0x48] sm:$0xff] }
  0x10   :  { %257 = vmatpush.bf16.msra.mxu2 %v516_v16  ;;  %v510_v28 = vld [vmem:[#allocation3] sm:$0xff]  ;;  %v533_v30 = vld [vmem:[%s696_s5 + $0x38] sm:$0xff]  ;;  %v532_v31 = vld [vmem:[%s696_s5 + $0x30] sm:$0xff] }
  0x11   :  { %270 = vmatpush.bf16.msra.mxu3 %v524_v17  ;;  %v518_v29 = vld [vmem:[#allocation3 + $0x40] sm:$0xff]  ;;  %357 = vmatpush.bf16.msra.mxu0 %v533_v30  ;;  %v529_v52 = vld [vmem:[%s696_s5 + $0x18] sm:$0xff]  ;;  %v528_v53 = vld [vmem:[%s696_s5 + $0x10] sm:$0xff] }
  0x12   :  { %408 = vmatmul.msk.bf16.vlgmr.msra.gmra.mxu1 %vm82_vm0, %v51_v14  ;;  %v531_v33 = vld [vmem:[%s696_s5 + $0x28] sm:$0xff]  ;;  %v530_v34 = vld [vmem:[%s696_s5 + $0x20] sm:$0xff] }
  0x13   :  { %105 = vmatpush.bf16.msrb.mxu1 %v407_v11  ;;  %v56_v36 = vld [vmem:[%s693_s2] sm:$0x3]  ;;  %v527_v54 = vld [vmem:[%s696_s5 + $0x8] sm:$0xff] }
  0x14   :  { %258 = vmatpush.bf16.msra.mxu2 %v515_v18  ;;  %v58_v37 = vperm.slane %v56_v36, 0  ;;  %v59_v38 = vperm.slane %v56_v36, 1  ;;  %v526_v55 = vld [vmem:[%s696_s5] sm:$0xff] }
  0x15   :  { %271 = vmatpush.bf16.msra.mxu3 %v523_v19  ;;  %358 = vmatpush.bf16.msra.mxu0 %v532_v31  ;;  %v537_v56 = vld [vmem:[%s695_s4] ss:$0 sm:$0xff] }
  0x16   :  { %v372_v4 = vld [vmem:[%s698_s7] sm:$0x1] }
  0x17   :  { %106 = vmatpush.bf16.msrb.mxu1 %v399_v15  ;;  %v538_v5 = vld [vmem:[%s697_s6] ss:$0 sm:$0xff]  ;;  %v373_v6 = vunpack.c.l.bf16 %v372_v4 }
  0x18   :  { %259 = vmatpush.bf16.msra.mxu2 %v514_v20  ;;  %v539_v15 = vld [vmem:[#allocation2] ss:$0 sm:$0xff] }
  0x19   :  { %272 = vmatpush.bf16.msra.mxu3 %v522_v21  ;;  %359 = vmatpush.bf16.msra.mxu0 %v531_v33  ;;  %v374_v10 = vperm.slane %v373_v6, 0 }
  0x1c   :  { %260 = vmatpush.bf16.msra.mxu2 %v513_v22 }
  0x1d   :  { %273 = vmatpush.bf16.msra.mxu3 %v521_v23  ;;  %360 = vmatpush.bf16.msra.mxu0 %v530_v34 }
  0x20   :  { %261 = vmatpush.bf16.msra.mxu2 %v512_v24 }
  0x21   :  { %274 = vmatpush.bf16.msra.mxu3 %v520_v25  ;;  %361 = vmatpush.bf16.msra.mxu0 %v529_v52 }
  0x22   :  { %409 = vmatmul.msk.bf16.vlgmr.msrb.gmra.mxu1 %vm82_vm0, %v51_v14 }
  0x24   :  { %262 = vmatpush.bf16.msra.mxu2 %v511_v26 }
  0x25   :  { %275 = vmatpush.bf16.msra.mxu3 %v519_v27  ;;  %362 = vmatpush.bf16.msra.mxu0 %v528_v53 }
  0x28   :  { %263 = vmatpush.bf16.msra.mxu2 %v510_v28 }
  0x29   :  { %276 = vmatpush.bf16.msra.mxu3 %v518_v29  ;;  %363 = vmatpush.bf16.msra.mxu0 %v527_v54 }
  0x2d   :  { %364 = vmatpush.bf16.msra.mxu0 %v526_v55 }
  0x8f   :  { %v95_v32 = vpop.f32.mrf.mxu1 }
  0x90   :  { %v96_v40 = vadd.f32 %v95_v32, %v58_v37 }
  0x97   :  { %v97_v35 = vpop.f32.mrf.mxu1 }
  0x9f   :  { %v108_v39 = vpop.f32.mrf.mxu1 }
  0xa0   :  { %v109_v41 = vadd.f32 %v108_v39, %v59_v38 }
  0xa2   :  { %v112_v42 = vpack.c.bf16 %v109_v41, %v96_v40 }
  0xa4   :  { %v113_v43 = vunpack.c.l.bf16 %v112_v42  ;;  %v114_v44 = vunpack.c.h.bf16 %v112_v42 }
  0xa6   :  { %v115_v45 = vmul.f32 0.010009766, %v113_v43  ;;  %v116_v46 = vmul.f32 0.010009766, %v114_v44 }
  0xa7   :  { %v110_v47 = vpop.f32.mrf.mxu1 }
  0xa8   :  { %v120_v48 = vmax.f32 %v113_v43, %v115_v45  ;;  %v121_v49 = vmax.f32 %v114_v44, %v116_v46 }
  0xaa   :  { %v122_v50 = vpack.c.bf16 %v120_v48, %v120_v48  ;;  %v123_v51 = vpack.c.bf16 %v121_v49, %v121_v49 }
  0xac   :  { %264 = vmatmul.bf16.vlgmr.msra.gmra.mxu2 %v122_v50  ;;  %277 = vmatmul.bf16.vlgmr.msra.gmra.mxu3 %v123_v51 }
 0x12f   :  { %v265_v57 = vpop.f32.mrf.mxu2  ;;  %v278_v58 = vpop.f32.mrf.mxu3 }
 0x130   :  { %v266_v59 = vadd.f32 %v537_v56, %v265_v57 }
 0x132   :  { %v279_v60 = vadd.f32 %v278_v58, %v266_v59 }
 0x134   :  { %v282_v61 = vpack.c.bf16 %v279_v60, %v279_v60 }
 0x136   :  { %v283_v62 = vunpack.c.l.bf16 %v282_v61 }
 0x137   :  { %v267_v63 = vpop.f32.mrf.mxu2  ;;  %v280_v0 = vpop.f32.mrf.mxu3 }
 0x138   :  { %v284_v1 = vmul.f32 0.010009766, %v283_v62 }
 0x13a   :  { %v287_v2 = vmax.f32 %v283_v62, %v284_v1 }
 0x13c   :  { %v288_v3 = vpack.c.bf16 %v287_v2, %v287_v2 }
 0x13e   :  { %365 = vmatmul.bf16.vlgmr.msra.gmra.mxu0 %v288_v3 }
 0x1bb   :  { %v366_v7 = vpop.f32.mrf.mxu0 }
 0x1bc   :  { %v367_v8 = vadd.f32 %v538_v5, %v366_v7 }
 0x1be   :  { %v370_v9 = vmul.f32 0.01, %v367_v8 }
 0x1c0   :  { %v371_v11 = vmax.f32 %v367_v8, %v370_v9 }
 0x1c2   :  { %v375_v12 = vmul.f32 %v374_v10, %v371_v11 }
 0x1c3   :  { %v368_v13 = vpop.f32.mrf.mxu0 }
 0x1c4   :  { %v377_v14 = vsel %vm376_vm1, %v375_v12, 0.0 }
 0x1c5   :  { %378 = vadd.xlane.f32.xlu0 %v377_v14 }
 0x238   :  { %v379_v16 = vpop.xlane.xlu0 %378 }
 0x239   :  { %v384_v17 = vadd.f32 %v539_v15, %v379_v16 }
 0x23b   :  { %386 = vst.msk [vmem:[%s700_s9] sm:$0xff] %vm385_vm2, %v384_v17 }
 0x23c   :  { %391 = vsyncpa [#allocation4], 1 }

</bundles_post_ra>
